<compile_context>
chip_gen: v7x
topology: tpu7x:2x2x1
jax: 0.10.0
libtpu: 0.0.40
codegen_flags: <defaults>
</compile_context>

<pallas_src>
import functools

import jax
import jax.numpy as jnp
from jax.experimental import pallas as pl
from jax.experimental.pallas import tpu as pltpu

H1, H2 = 400, 300          # logical hidden sizes (PyTorch)
H1_PAD, H2_PAD = 512, 384  # lane-aligned hidden sizes
LANE = 128
SUBLANE = 8


def _round_up(n, m):
    return (n + m - 1) // m * m


def _actor_kernel(ma_ref, x_ref, w1_ref, b1_ref, w2_ref, b2_ref,
                  w3_ref, b3_ref, o_ref):
    """One batch tile of the 3-layer MLP. Accumulation + epilogue in f32."""
    max_action = ma_ref[0, 0]  # SMEM scalar

    # Layer 1: (TB, S_pad) @ (S_pad, 512) + (1, 512) -> ReLU
    h1 = jnp.dot(x_ref[...], w1_ref[...], preferred_element_type=jnp.float32)
    h1 = jnp.maximum(h1 + b1_ref[...], 0.0)

    # Layer 2: (TB, 512) @ (512, 384) + (1, 384) -> ReLU
    h2 = jnp.dot(h1.astype(w2_ref.dtype), w2_ref[...],
                 preferred_element_type=jnp.float32)
    h2 = jnp.maximum(h2 + b2_ref[...], 0.0)

    # Layer 3: (TB, 384) @ (384, A_pad) + (1, A_pad) -> max_action * tanh
    h3 = jnp.dot(h2.astype(w3_ref.dtype), w3_ref[...],
                 preferred_element_type=jnp.float32)
    o_ref[...] = max_action * jnp.tanh(h3 + b3_ref[...])


def init_actor_params(key, state_dim, action_dim):
    """PyTorch nn.Linear default init (U[-1/sqrt(fan_in), +1/sqrt(fan_in)])."""
    def linear(k, fan_in, fan_out):
        kw, kb = jax.random.split(k)
        bound = 1.0 / jnp.sqrt(float(fan_in))
        w = jax.random.uniform(kw, (fan_in, fan_out), jnp.float32, -bound, bound)
        b = jax.random.uniform(kb, (1, fan_out), jnp.float32, -bound, bound)
        return w, b

    k1, k2, k3 = jax.random.split(key, 3)
    w1, b1 = linear(k1, state_dim, H1)
    w2, b2 = linear(k2, H1, H2)
    w3, b3 = linear(k3, H2, action_dim)
    return {"W1": w1, "b1": b1, "W2": w2, "b2": b2, "W3": w3, "b3": b3}


def pad_actor_params(params, weight_dtype=jnp.bfloat16):
    """Zero-pad to TPU-friendly shapes and (optionally) store weights in bf16.

    Done once, outside the hot path. Biases stay f32 (epilogue is f32).
    State dim is padded only to a sublane multiple (8), hidden dims to lane
    multiples, action dim to 128 for lane-dense output stores.
    """
    w1, b1 = params["W1"], params["b1"]
    w2, b2 = params["W2"], params["b2"]
    w3, b3 = params["W3"], params["b3"]
    state_dim, action_dim = w1.shape[0], w3.shape[1]
    s_pad = _round_up(state_dim, SUBLANE)
    a_pad = _round_up(action_dim, LANE)

    padded = {
        "W1": jnp.zeros((s_pad, H1_PAD), weight_dtype)
                 .at[:state_dim, :H1].set(w1.astype(weight_dtype)),
        "b1": jnp.zeros((1, H1_PAD), jnp.float32).at[:, :H1].set(b1),
        "W2": jnp.zeros((H1_PAD, H2_PAD), weight_dtype)
                 .at[:H1, :H2].set(w2.astype(weight_dtype)),
        "b2": jnp.zeros((1, H2_PAD), jnp.float32).at[:, :H2].set(b2),
        "W3": jnp.zeros((H2_PAD, a_pad), weight_dtype)
                 .at[:H2, :action_dim].set(w3.astype(weight_dtype)),
        "b3": jnp.zeros((1, a_pad), jnp.float32).at[:, :action_dim].set(b3),
    }
    return padded, state_dim, action_dim


@functools.partial(jax.jit, static_argnames=("action_dim", "tb_max"))
def actor_forward(x, padded_params, max_action, action_dim, *, tb_max=512):
    """x: (batch, state_dim); returns (batch, action_dim) float32."""
    w1, b1 = padded_params["W1"], padded_params["b1"]
    w2, b2 = padded_params["W2"], padded_params["b2"]
    w3, b3 = padded_params["W3"], padded_params["b3"]

    batch, s = x.shape
    s_pad = w1.shape[0]
    a_pad = w3.shape[1]
    compute_dtype = w1.dtype

    # --- batch tiling -------------------------------------------------------
    # Even tiles (<= 7 padded rows per tile) instead of rounding the whole
    # batch up to a multiple of tb_max. For mid/large batches that would fit
    # in one tile, split into 2 so both v7x TensorCores get work.
    b8 = _round_up(batch, SUBLANE)
    n_tiles = -(-b8 // tb_max)                 # cdiv
    if n_tiles == 1 and b8 >= 2 * LANE:
        n_tiles = 2
    tb = _round_up(-(-b8 // n_tiles), SUBLANE)
    b_pad = n_tiles * tb

    # Cast x exactly once into the padded compute-dtype buffer.
    x_p = jnp.zeros((b_pad, s_pad), compute_dtype).at[:batch, :s].set(
        x.astype(compute_dtype))
    ma = jnp.full((1, 1), max_action, jnp.float32)

    # Weights/biases: constant index_map -> VMEM-resident across grid steps;
    # single-buffered since they are DMA'd only once.
    resident = lambda i: (0, 0)
    once = pl.Buffered(1)

    out_padded = pl.pallas_call(
        _actor_kernel,
        out_shape=jax.ShapeDtypeStruct((b_pad, a_pad), jnp.float32),
        grid=(n_tiles,),
        in_specs=[
            pl.BlockSpec(memory_space=pltpu.MemorySpace.SMEM),      # max_action
            pl.BlockSpec((tb, s_pad), lambda i: (i, 0)),            # x tile
            pl.BlockSpec((s_pad, H1_PAD), resident, pipeline_mode=once),  # W1
            pl.BlockSpec((1, H1_PAD), resident, pipeline_mode=once),      # b1
            pl.BlockSpec((H1_PAD, H2_PAD), resident, pipeline_mode=once), # W2
            pl.BlockSpec((1, H2_PAD), resident, pipeline_mode=once),      # b2
            pl.BlockSpec((H2_PAD, a_pad), resident, pipeline_mode=once),  # W3
            pl.BlockSpec((1, a_pad), resident, pipeline_mode=once),       # b3
        ],
        out_specs=pl.BlockSpec((tb, a_pad), lambda i: (i, 0)),
        compiler_params=pltpu.CompilerParams(
            dimension_semantics=("parallel",),
        ),
    )(ma, x_p, w1, b1, w2, b2, w3, b3)

    return out_padded[:batch, :action_dim]


def actor_reference(x, params, max_action):
    """Pure-JAX reference matching the PyTorch forward (full f32 matmuls)."""
    hi = jax.lax.Precision.HIGHEST
    h = jnp.maximum(jnp.dot(x, params["W1"], precision=hi) + params["b1"], 0.0)
    h = jnp.maximum(jnp.dot(h, params["W2"], precision=hi) + params["b2"], 0.0)
    return max_action * jnp.tanh(jnp.dot(h, params["W3"], precision=hi)
                                 + params["b3"])


if __name__ == "__main__":
    batch = 2
    state_dim = 8
    action_dim = 4
    max_action = 2.0

    key = jax.random.PRNGKey(0)
    kx, kp = jax.random.split(key)
    x = jax.random.normal(kx, (batch, state_dim), jnp.float32)
    params = init_actor_params(kp, state_dim, action_dim)
    ref = actor_reference(x, params, max_action)

    # f32-weight path: matches the PyTorch f32 forward.
    padded_f32, _, _ = pad_actor_params(params, weight_dtype=jnp.float32)
    out_f32 = actor_forward(x, padded_f32, jnp.float32(max_action), action_dim)
    out_f32 = jax.block_until_ready(out_f32)
    assert out_f32.shape == (batch, action_dim)
    assert jnp.allclose(out_f32, ref, atol=1e-3, rtol=1e-3), "f32 mismatch vs reference"

    # bf16-weight path (default for perf): f32 accumulation + f32 epilogue.
    padded_bf16, _, _ = pad_actor_params(params)  # weight_dtype=bf16 default
    out_bf16 = actor_forward(x, padded_bf16, jnp.float32(max_action), action_dim)
    out_bf16 = jax.block_until_ready(out_bf16)
    assert out_bf16.shape == (batch, action_dim)
    assert jnp.allclose(out_bf16, ref, atol=5e-2, rtol=5e-2), "bf16 mismatch vs reference"

    print("KERNEL_OK")
</pallas_src>

<mosaic_0001>
module attributes {stable_mosaic.version = 11 : i64} {
  func.func @_actor_kernel(%arg0: i32, %arg1: memref<1x1xf32, #tpu.memory_space<smem>>, %arg2: memref<8x8xf32, #tpu.memory_space<vmem>>, %arg3: memref<8x512xf32, #tpu.memory_space<vmem>>, %arg4: memref<1x512xf32, #tpu.memory_space<vmem>>, %arg5: memref<512x384xf32, #tpu.memory_space<vmem>>, %arg6: memref<1x384xf32, #tpu.memory_space<vmem>>, %arg7: memref<384x128xf32, #tpu.memory_space<vmem>>, %arg8: memref<1x128xf32, #tpu.memory_space<vmem>>, %arg9: memref<8x128xf32, #tpu.memory_space<vmem>>) attributes {dimension_semantics = [#tpu.dimension_semantics<parallel>], iteration_bounds = array<i64: 1>, scalar_prefetch = 0 : i64, scratch_operands = 0 : i64, tpu.core_type = #tpu.core_type<tc>, window_params = [{transform_indices = @transform_0, window_bounds = array<i64: 1, 1>}, {transform_indices = @transform_1, window_bounds = array<i64: 8, 8>}, {pipeline_mode = #tpu.pipeline_mode<synchronous>, transform_indices = @transform_2, window_bounds = array<i64: 8, 512>}, {pipeline_mode = #tpu.pipeline_mode<synchronous>, transform_indices = @transform_3, window_bounds = array<i64: 1, 512>}, {pipeline_mode = #tpu.pipeline_mode<synchronous>, transform_indices = @transform_4, window_bounds = array<i64: 512, 384>}, {pipeline_mode = #tpu.pipeline_mode<synchronous>, transform_indices = @transform_5, window_bounds = array<i64: 1, 384>}, {pipeline_mode = #tpu.pipeline_mode<synchronous>, transform_indices = @transform_6, window_bounds = array<i64: 384, 128>}, {pipeline_mode = #tpu.pipeline_mode<synchronous>, transform_indices = @transform_7, window_bounds = array<i64: 1, 128>}, {transform_indices = @transform_8, window_bounds = array<i64: 8, 128>}]} {
    %c0 = arith.constant 0 : index
    %c0_0 = arith.constant 0 : index
    %0 = memref.load %arg1[%c0, %c0_0] : memref<1x1xf32, #tpu.memory_space<smem>>
    %c0_1 = arith.constant 0 : index
    %c0_2 = arith.constant 0 : index
    %1 = vector.load %arg2[%c0_1, %c0_2] : memref<8x8xf32, #tpu.memory_space<vmem>>, vector<8x8xf32>
    %c0_3 = arith.constant 0 : index
    %c0_4 = arith.constant 0 : index
    %2 = vector.load %arg3[%c0_3, %c0_4] : memref<8x512xf32, #tpu.memory_space<vmem>>, vector<8x512xf32>
    %cst = arith.constant dense<0.000000e+00> : vector<8x512xf32>
    %3 = tpu.matmul %1, %2, %cst {dimension_numbers = #tpu.dot_dimension_numbers<[1], [0], [0], [1], [0, 0, 1, 1], [], []>} : vector<8x8xf32>, vector<8x512xf32>, vector<8x512xf32> -> vector<8x512xf32>
    %c0_5 = arith.constant 0 : index
    %c0_6 = arith.constant 0 : index
    %4 = vector.load %arg4[%c0_5, %c0_6] : memref<1x512xf32, #tpu.memory_space<vmem>>, vector<1x512xf32>
    %5 = vector.broadcast %4 : vector<1x512xf32> to vector<8x512xf32>
    %6 = arith.addf %3, %5 : vector<8x512xf32>
    %cst_7 = arith.constant 0.000000e+00 : f32
    %7 = vector.broadcast %cst_7 : f32 to vector<8x512xf32>
    %8 = arith.maximumf %6, %7 : vector<8x512xf32>
    %c0_8 = arith.constant 0 : index
    %c0_9 = arith.constant 0 : index
    %9 = vector.load %arg5[%c0_8, %c0_9] : memref<512x384xf32, #tpu.memory_space<vmem>>, vector<512x384xf32>
    %cst_10 = arith.constant dense<0.000000e+00> : vector<8x384xf32>
    %10 = tpu.matmul %8, %9, %cst_10 {dimension_numbers = #tpu.dot_dimension_numbers<[1], [0], [0], [1], [0, 0, 1, 1], [], []>} : vector<8x512xf32>, vector<512x384xf32>, vector<8x384xf32> -> vector<8x384xf32>
    %c0_11 = arith.constant 0 : index
    %c0_12 = arith.constant 0 : index
    %11 = vector.load %arg6[%c0_11, %c0_12] : memref<1x384xf32, #tpu.memory_space<vmem>>, vector<1x384xf32>
    %12 = vector.broadcast %11 : vector<1x384xf32> to vector<8x384xf32>
    %13 = arith.addf %10, %12 : vector<8x384xf32>
    %cst_13 = arith.constant 0.000000e+00 : f32
    %14 = vector.broadcast %cst_13 : f32 to vector<8x384xf32>
    %15 = arith.maximumf %13, %14 : vector<8x384xf32>
    %c0_14 = arith.constant 0 : index
    %c0_15 = arith.constant 0 : index
    %16 = vector.load %arg7[%c0_14, %c0_15] : memref<384x128xf32, #tpu.memory_space<vmem>>, vector<384x128xf32>
    %cst_16 = arith.constant dense<0.000000e+00> : vector<8x128xf32>
    %17 = tpu.matmul %15, %16, %cst_16 {dimension_numbers = #tpu.dot_dimension_numbers<[1], [0], [0], [1], [0, 0, 1, 1], [], []>} : vector<8x384xf32>, vector<384x128xf32>, vector<8x128xf32> -> vector<8x128xf32>
    %c0_17 = arith.constant 0 : index
    %c0_18 = arith.constant 0 : index
    %18 = vector.load %arg8[%c0_17, %c0_18] : memref<1x128xf32, #tpu.memory_space<vmem>>, vector<1x128xf32>
    %19 = vector.broadcast %18 : vector<1x128xf32> to vector<8x128xf32>
    %20 = arith.addf %17, %19 : vector<8x128xf32>
    %21 = math.tanh %20 : vector<8x128xf32>
    %22 = vector.broadcast %0 : f32 to vector<8x128xf32>
    %23 = arith.mulf %22, %21 : vector<8x128xf32>
    %c0_19 = arith.constant 0 : index
    %c0_20 = arith.constant 0 : index
    %24 = vector.load %arg9[%c0_19, %c0_20] : memref<8x128xf32, #tpu.memory_space<vmem>>, vector<8x128xf32>
    tpu.vector_store %arg9[%c0_19, %c0_20], %23 {strides = array<i32>} : memref<8x128xf32, #tpu.memory_space<vmem>>, vector<8x128xf32>,
    return
  }
  func.func @transform_0(%arg0: i32) -> (i32, i32) {
    %c0_i32 = arith.constant 0 : i32
    %c0_i32_0 = arith.constant 0 : i32
    %c0_i32_1 = arith.constant 0 : i32
    return %c0_i32, %c0_i32_0 : i32, i32
  }
  func.func @transform_1(%arg0: i32) -> (i32, i32) {
    %c0_i32 = arith.constant 0 : i32
    %c0_i32_0 = arith.constant 0 : i32
    return %arg0, %c0_i32 : i32, i32
  }
  func.func @transform_2(%arg0: i32) -> (i32, i32) {
    %c0_i32 = arith.constant 0 : i32
    %c0_i32_0 = arith.constant 0 : i32
    %c0_i32_1 = arith.constant 0 : i32
    return %c0_i32, %c0_i32_0 : i32, i32
  }
  func.func @transform_3(%arg0: i32) -> (i32, i32) {
    %c0_i32 = arith.constant 0 : i32
    %c0_i32_0 = arith.constant 0 : i32
    %c0_i32_1 = arith.constant 0 : i32
    return %c0_i32, %c0_i32_0 : i32, i32
  }
  func.func @transform_4(%arg0: i32) -> (i32, i32) {
    %c0_i32 = arith.constant 0 : i32
    %c0_i32_0 = arith.constant 0 : i32
    %c0_i32_1 = arith.constant 0 : i32
    return %c0_i32, %c0_i32_0 : i32, i32
  }
  func.func @transform_5(%arg0: i32) -> (i32, i32) {
    %c0_i32 = arith.constant 0 : i32
    %c0_i32_0 = arith.constant 0 : i32
    %c0_i32_1 = arith.constant 0 : i32
    return %c0_i32, %c0_i32_0 : i32, i32
  }
  func.func @transform_6(%arg0: i32) -> (i32, i32) {
    %c0_i32 = arith.constant 0 : i32
    %c0_i32_0 = arith.constant 0 : i32
    %c0_i32_1 = arith.constant 0 : i32
    return %c0_i32, %c0_i32_0 : i32, i32
  }
  func.func @transform_7(%arg0: i32) -> (i32, i32) {
    %c0_i32 = arith.constant 0 : i32
    %c0_i32_0 = arith.constant 0 : i32
    %c0_i32_1 = arith.constant 0 : i32
    return %c0_i32, %c0_i32_0 : i32, i32
  }
  func.func @transform_8(%arg0: i32) -> (i32, i32) {
    %c0_i32 = arith.constant 0 : i32
    %c0_i32_0 = arith.constant 0 : i32
    return %arg0, %c0_i32 : i32, i32
  }
}

</mosaic_0001>

<bundles_post_ra>
// kernel: actor_forward.1
= control target key start
LH: loop header
LB: loop body
LE: loop exit
PB: predicated region body
PF: predicated region fallthrough
CT: control target
= control target key end

     0   :  { %14 = vsyncpa [#allocation4], 0  ;;  %s1584_s0 = inlined_call_operand.<no memory space> [shape: f32[1,1], index: 0, kind: input, shape index: {}]   ;;  %s1585_s1 = inlined_call_operand.vmem [shape: f32[8,8], index: 1, kind: input, shape index: {}]   ;;  %s1586_s2 = inlined_call_operand.hbm [shape: f32[8,512], index: 2, kind: input, shape index: {}]   ;;  %s1587_s3 = inlined_call_operand.vmem [shape: f32[1,512], index: 3, kind: input, shape index: {}]   ;;  %s1588_s4 = inlined_call_operand.hbm [shape: f32[512,384], index: 4, kind: input, shape index: {}]   ;;  %s1589_s5 = inlined_call_operand.vmem [shape: f32[1,384], index: 5, kind: input, shape index: {}]   ;;  %s1590_s6 = inlined_call_operand.hbm [shape: f32[384,128], index: 6, kind: input, shape index: {}]   ;;  %s1591_s7 = inlined_call_operand.vmem [shape: f32[1,128], index: 7, kind: input, shape index: {}]   ;;  %s1592_s8 = inlined_call_operand.vmem [shape: f32[8,128], index: 8, kind: output, shape index: {}]  }
   0x1   :  { %15 = vsyncpa [#allocation6], 0  ;;  %s1440_s27 = smov [#allocation5]   ;;  %s1370_s9 = scalar_lea.hbm %s1588_s4, 24576 }
   0x2   :  { %s37_s28 = sshll.u32 %s1440_s27, 4  ;;  %p1371_p0 = scmp.ne.s32.totalorder %s1588_s4, %s1370_s9  ;;  %s38_s28 = int_to_ptr.vmem [resolvable:$true] %s37_s28 }
   0x3   :  { %p1374_p1 = scmp.lt.u32.totalorder %s1370_s9, %s1588_s4 }
   0x5   :  { %p1376_p2 = pnand %p1374_p1, %p1371_p0 }
   0x7   :  { %1379 = shalt.err (!%p1376_p2)
}
   0x8   :  { %s1380_s14 = scalar_lea.vmem %s38_s28, 24576  ;;  %p1385_p4 = scmp.lt.s32.totalorder %s38_s28, %s38_s28 }
   0x9   :  { %p1381_p3 = scmp.ne.s32.totalorder %s38_s28, %s1380_s14  ;;  %p1386_p5 = scmp.lt.s32.totalorder %s1380_s14, %s1380_s14 }
   0xb   :  { %p1387_p6 = por %p1386_p5, %p1385_p4 }
   0xd   :  { %p1388_p7 = pnand %p1387_p6, %p1381_p3 }
   0xf   :  { %1391 = shalt.err (!%p1388_p7)
}
  0x10   :  { %s1441_s15 = smov 384   ;;  %s1442_s16 = smov 24  }
  0x11   :  { %43 = dma.hbm_to_vmem [thread:$0]  %s1588_s4, 24576, %s38_s28, [#allocation6], %s1441_s15, %s1441_s15, %s1442_s16  }
  0x12   :  { %s1443_s19 = smov [#allocation3]   ;;  %s1444_s21 = smov [#allocation7]  }
  0x13   :  { %s26_s20 = sshll.u32 %s1443_s19, 4  ;;  %s51_s22 = sshll.u32 %s1444_s21, 4  ;;  %s27_s20 = int_to_ptr.vmem [resolvable:$true] %s26_s20  ;;  %s52_s22 = int_to_ptr.vmem [resolvable:$true] %s51_s22 }
  0x14   :  { %s1392_s25 = scalar_lea.hbm %s1586_s2, 512 }
  0x15   :  { %p1393_p8 = scmp.ne.s32.totalorder %s1586_s2, %s1392_s25  ;;  %p1396_p9 = scmp.lt.u32.totalorder %s1392_s25, %s1586_s2 }
  0x17   :  { %p1398_p10 = pnand %p1396_p9, %p1393_p8 }
  0x19   :  { %1401 = shalt.err (!%p1398_p10)
}
  0x1a   :  { %s1402_s4 = scalar_lea.vmem %s27_s20, 512  ;;  %p1407_p12 = scmp.lt.s32.totalorder %s27_s20, %s27_s20 }
  0x1b   :  { %p1403_p11 = scmp.ne.s32.totalorder %s27_s20, %s1402_s4  ;;  %p1408_p13 = scmp.lt.s32.totalorder %s1402_s4, %s1402_s4 }
  0x1d   :  { %p1409_p0 = por %p1408_p13, %p1407_p12 }
  0x1f   :  { %p1410_p1 = pnand %p1409_p0, %p1403_p11 }
  0x21   :  { %1413 = shalt.err (!%p1410_p1)
}
  0x22   :  { %29 = dma.hbm_to_vmem [thread:$0]  %s1586_s2, 512, %s27_s20, [#allocation4]  }
  0x23   :  { %s1414_s12 = scalar_lea.hbm %s1590_s6, 6144 }
  0x24   :  { %p1415_p2 = scmp.ne.s32.totalorder %s1590_s6, %s1414_s12  ;;  %p1418_p3 = scmp.lt.u32.totalorder %s1414_s12, %s1590_s6 }
  0x26   :  { %p1420_p4 = pnand %p1418_p3, %p1415_p2 }
  0x28   :  { %1423 = shalt.err (!%p1420_p4)
}
  0x29   :  { %s1424_s17 = scalar_lea.vmem %s52_s22, 6144  ;;  %p1429_p6 = scmp.lt.s32.totalorder %s52_s22, %s52_s22 }
  0x2a   :  { %p1425_p5 = scmp.ne.s32.totalorder %s52_s22, %s1424_s17  ;;  %p1430_p7 = scmp.lt.s32.totalorder %s1424_s17, %s1424_s17 }
  0x2c   :  { %p1431_p8 = por %p1430_p7, %p1429_p6 }
  0x2e   :  { %p1432_p9 = pnand %p1431_p8, %p1425_p5 }
  0x30   :  { %1435 = shalt.err (!%p1432_p9)
}
  0x31   :  { %s1445_s2 = smov 128   ;;  %s1446_s18 = smov 8  }
  0x32   :  { %57 = dma.hbm_to_vmem [thread:$0]  %s1590_s6, 6144, %s52_s22, [#allocation6], %s1445_s2, %s1445_s2, %s1446_s18  }
  0x33   :  { %1436 = dma.done.wait [#allocation4], 512  }
  0x34   :  { %1437 = vsyncadd [#allocation4], 4294966784 }
  0x35   :  { %1438 = dma.done.wait [#allocation6], 30720  }
  0x36   :  { %1439 = vsyncadd [#allocation6], 4294936576  ;;  %v1447_v0 = vmov 0.0   ;;  %v72_v1 = vld [vmem:[#allocation3 + $0x8] sm:$0xff]  ;;  %v71_v2 = vld [vmem:[#allocation3] sm:$0xff]  ;;  %vm97_vm0 = vcmask 64512  }
  0x37   :  { %165 = vmatprep.mubr.f32.mxu0 %v1447_v0  ;;  %236 = vmatprep.mubr.f32.mxu1 %v1447_v0  ;;  %v70_v3 = vld [vmem:[%s1585_s1] sm:$0xff]  ;;  %v74_v4 = vld [vmem:[#allocation3 + $0x18] sm:$0xff]  ;;  %v73_v5 = vld [vmem:[#allocation3 + $0x10] sm:$0xff]  ;;  %vm1449_vm1 = vmmov 0  }
  0x38   :  { %101 = vmatprep.subr.mxu0 %v72_v1  ;;  %v248_v6 = vld [vmem:[#allocation5 + $0x8] sm:$0xff]  ;;  %172 = vmatprep.subr.mxu1 %v74_v4  ;;  %v251_v7 = vld [vmem:[#allocation5 + $0x20] sm:$0xff]  ;;  %v250_v9 = vld [vmem:[#allocation5 + $0x18] sm:$0xff] }
  0x39   :  { %102 = vmatpush1.msra.mxu0 %v71_v2  ;;  %v247_v8 = vld [vmem:[#allocation5] sm:$0xff]  ;;  %173 = vmatpush1.msra.mxu1 %v73_v5  ;;  %v1106_v10 = vpack.c.bf16 %v251_v7, %v248_v6  ;;  %v254_v12 = vld [vmem:[#allocation5 + $0x38] sm:$0xff]  ;;  %v257_v13 = vld [vmem:[#allocation5 + $0x50] sm:$0xff] }
  0x3a   :  { %946 = vmatmul.mubr.msk.f32.vlgmr.msra.gmra.mrb[0].mxu0 %vm97_vm0, %v70_v3  ;;  %v1108_v11 = vpack.c.bf16 %v250_v9, %v247_v8  ;;  %v253_v14 = vld [vmem:[#allocation5 + $0x30] sm:$0xff]  ;;  %947 = vmatmul.mubr.msk.f32.vlgmr.msra.gmra.mrb[0].mxu1 %vm97_vm0, %v70_v3  ;;  %v1110_v15 = vpack.c.bf16 %v257_v13, %v254_v12  ;;  %v256_v16 = vld [vmem:[#allocation5 + $0x48] sm:$0xff]  ;;  %v263_v18 = vld [vmem:[#allocation5 + $0x80] sm:$0xff] }
  0x3b   :  { %v260_v17 = vld [vmem:[#allocation5 + $0x68] sm:$0xff]  ;;  %1107 = vmatprep.subr.bf16.mxu0 %v1106_v10  ;;  %v1112_v19 = vpack.c.bf16 %v256_v16, %v253_v14  ;;  %v259_v21 = vld [vmem:[#allocation5 + $0x60] sm:$0xff]  ;;  %v262_v22 = vld [vmem:[#allocation5 + $0x78] sm:$0xff] }
  0x3c   :  { %1109 = vmatpush1.bf16.msra.mxu0 %v1108_v11  ;;  %v1114_v20 = vpack.c.bf16 %v263_v18, %v260_v17  ;;  %v266_v23 = vld [vmem:[#allocation5 + $0x98] sm:$0xff]  ;;  %v269_v24 = vld [vmem:[#allocation5 + $0xb0] sm:$0xff]  ;;  %v1116_v25 = vpack.c.bf16 %v262_v22, %v259_v21  ;;  %v268_v28 = vld [vmem:[#allocation5 + $0xa8] sm:$0xff] }
  0x3d   :  { %1111 = vmatprep.subr.bf16.mxu0 %v1110_v15  ;;  %v1118_v26 = vpack.c.bf16 %v269_v24, %v266_v23  ;;  %v265_v27 = vld [vmem:[#allocation5 + $0x90] sm:$0xff]  ;;  %v272_v29 = vld [vmem:[#allocation5 + $0xc8] sm:$0xff]  ;;  %v275_v30 = vld [vmem:[#allocation5 + $0xe0] sm:$0xff] }
  0x3e   :  { %v297_v31 = vld [vmem:[#allocation5 + $0x190] sm:$0xff]  ;;  %v300_v32 = vld [vmem:[#allocation5 + $0x1a8] sm:$0xff]  ;;  %v1120_v33 = vpack.c.bf16 %v268_v28, %v265_v27  ;;  %v1122_v37 = vpack.c.bf16 %v275_v30, %v272_v29  ;;  %v271_v38 = vld [vmem:[#allocation5 + $0xc0] sm:$0xff] }
  0x3f   :  { %v1234_v34 = vpack.c.bf16 %v300_v32, %v297_v31  ;;  %v249_v35 = vld [vmem:[#allocation5 + $0x10] sm:$0xff]  ;;  %v252_v36 = vld [vmem:[#allocation5 + $0x28] sm:$0xff]  ;;  %v274_v39 = vld [vmem:[#allocation5 + $0xd8] sm:$0xff] }
  0x40   :  { %1113 = vmatpush1.bf16.msra.mxu0 %v1112_v19  ;;  %v1236_v40 = vpack.c.bf16 %v252_v36, %v249_v35  ;;  %v303_v41 = vld [vmem:[#allocation5 + $0x1c0] sm:$0xff]  ;;  %v278_v42 = vld [vmem:[#allocation5 + $0xf8] sm:$0xff]  ;;  %v281_v43 = vld [vmem:[#allocation5 + $0x110] sm:$0xff]  ;;  %v1124_v48 = vpack.c.bf16 %v274_v39, %v271_v38 }
  0x41   :  { %1115 = vmatprep.subr.bf16.mxu0 %v1114_v20  ;;  %1235 = vmatprep.subr.bf16.mxu1 %v1234_v34  ;;  %v306_v44 = vld [vmem:[#allocation5 + $0x1d8] sm:$0xff]  ;;  %v255_v46 = vld [vmem:[#allocation5 + $0x40] sm:$0xff]  ;;  %v309_v50 = vld [vmem:[#allocation5 + $0x1f0] sm:$0xff]  ;;  %v1126_v52 = vpack.c.bf16 %v281_v43, %v278_v42 }
  0x42   :  { %1237 = vmatpush3.bf16.msra.mxu1 %v1236_v40  ;;  %v1238_v45 = vpack.c.bf16 %v306_v44, %v303_v41  ;;  %v258_v47 = vld [vmem:[#allocation5 + $0x58] sm:$0xff]  ;;  %v312_v51 = vld [vmem:[#allocation5 + $0x208] sm:$0xff]  ;;  %v277_v53 = vld [vmem:[#allocation5 + $0xf0] sm:$0xff] }
  0x43   :  { %v1240_v49 = vpack.c.bf16 %v258_v47, %v255_v46  ;;  %v280_v54 = vld [vmem:[#allocation5 + $0x108] sm:$0xff]  ;;  %v1242_v55 = vpack.c.bf16 %v312_v51, %v309_v50  ;;  %v261_v56 = vld [vmem:[#allocation5 + $0x70] sm:$0xff]  ;;  %v287_v58 = vld [vmem:[#allocation5 + $0x140] sm:$0xff] }
  0x44   :  { %1117 = vmatpush1.bf16.msra.mxu0 %v1116_v25  ;;  %1239 = vmatprep.subr.bf16.mxu1 %v1238_v45  ;;  %v284_v57 = vld [vmem:[#allocation5 + $0x128] sm:$0xff]  ;;  %v315_v61 = vld [vmem:[#allocation5 + $0x220] sm:$0xff]  ;;  %v318_v62 = vld [vmem:[#allocation5 + $0x238] sm:$0xff]  ;;  %v1128_v63 = vpack.c.bf16 %v280_v54, %v277_v53 }
  0x45   :  { %1119 = vmatprep.subr.bf16.mxu0 %v1118_v26  ;;  %v264_v59 = vld [vmem:[#allocation5 + $0x88] sm:$0xff]  ;;  %v1246_v1 = vpack.c.bf16 %v318_v62, %v315_v61  ;;  %v267_v2 = vld [vmem:[#allocation5 + $0xa0] sm:$0xff]  ;;  %v270_v3 = vld [vmem:[#allocation5 + $0xb8] sm:$0xff]  ;;  %v1130_v4 = vpack.c.bf16 %v287_v58, %v284_v57 }
  0x46   :  { %1241 = vmatpush3.bf16.msra.mxu1 %v1240_v49  ;;  %v1244_v60 = vpack.c.bf16 %v264_v59, %v261_v56  ;;  %v283_v5 = vld [vmem:[#allocation5 + $0x120] sm:$0xff]  ;;  %v286_v6 = vld [vmem:[#allocation5 + $0x138] sm:$0xff]  ;;  %v321_v7 = vld [vmem:[#allocation5 + $0x250] sm:$0xff]  ;;  %v1248_v11 = vpack.c.bf16 %v270_v3, %v267_v2 }
  0x47   :  { %1243 = vmatprep.subr.bf16.mxu1 %v1242_v55  ;;  %v290_v8 = vld [vmem:[#allocation5 + $0x158] sm:$0xff]  ;;  %v293_v9 = vld [vmem:[#allocation5 + $0x170] sm:$0xff]  ;;  %v324_v10 = vld [vmem:[#allocation5 + $0x268] sm:$0xff]  ;;  %v1132_v12 = vpack.c.bf16 %v286_v6, %v283_v5 }
  0x48   :  { %1121 = vmatpush1.bf16.msra.mxu0 %v1120_v33  ;;  %v289_v13 = vld [vmem:[#allocation5 + $0x150] sm:$0xff]  ;;  %v1250_v14 = vpack.c.bf16 %v324_v10, %v321_v7  ;;  %v276_v16 = vld [vmem:[#allocation5 + $0xe8] sm:$0xff]  ;;  %v1134_v17 = vpack.c.bf16 %v293_v9, %v290_v8  ;;  %v327_v19 = vld [vmem:[#allocation5 + $0x280] sm:$0xff] }
  0x49   :  { %1123 = vmatprep.subr.bf16.mxu0 %v1122_v37  ;;  %v273_v15 = vld [vmem:[#allocation5 + $0xd0] sm:$0xff]  ;;  %v292_v18 = vld [vmem:[#allocation5 + $0x168] sm:$0xff]  ;;  %v330_v20 = vld [vmem:[#allocation5 + $0x298] sm:$0xff] }
  0x4a   :  { %1245 = vmatpush3.bf16.msra.mxu1 %v1244_v60  ;;  %v296_v21 = vld [vmem:[#allocation5 + $0x188] sm:$0xff]  ;;  %v299_v22 = vld [vmem:[#allocation5 + $0x1a0] sm:$0xff]  ;;  %v1252_v23 = vpack.c.bf16 %v276_v16, %v273_v15  ;;  %v1136_v24 = vpack.c.bf16 %v292_v18, %v289_v13  ;;  %v1254_v26 = vpack.c.bf16 %v330_v20, %v327_v19  ;;  %v282_v28 = vld [vmem:[#allocation5 + $0x118] sm:$0xff] }
  0x4b   :  { %1247 = vmatprep.subr.bf16.mxu1 %v1246_v1  ;;  %v295_v25 = vld [vmem:[#allocation5 + $0x180] sm:$0xff]  ;;  %v1138_v29 = vpack.c.bf16 %v299_v22, %v296_v21  ;;  %v298_v30 = vld [vmem:[#allocation5 + $0x198] sm:$0xff]  ;;  %v333_v31 = vld [vmem:[#allocation5 + $0x2b0] sm:$0xff] }
  0x4c   :  { %1125 = vmatpush1.bf16.msra.mxu0 %v1124_v48  ;;  %v279_v27 = vld [vmem:[#allocation5 + $0x100] sm:$0xff]  ;;  %v336_v32 = vld [vmem:[#allocation5 + $0x2c8] sm:$0xff]  ;;  %v302_v33 = vld [vmem:[#allocation5 + $0x1b8] sm:$0xff]  ;;  %v1140_v36 = vpack.c.bf16 %v298_v30, %v295_v25  ;;  %v77_v30 = vlaneseq }
  0x4d   :  { %1127 = vmatprep.subr.bf16.mxu0 %v1126_v52  ;;  %v305_v34 = vld [vmem:[#allocation5 + $0x1d0] sm:$0xff]  ;;  %v1256_v35 = vpack.c.bf16 %v282_v28, %v279_v27  ;;  %v1258_v37 = vpack.c.bf16 %v336_v32, %v333_v31  ;;  %v288_v39 = vld [vmem:[#allocation5 + $0x148] sm:$0xff]  ;;  %v311_v44 = vld [vmem:[#allocation5 + $0x200] sm:$0xff] }
  0x4e   :  { %1249 = vmatpush3.bf16.msra.mxu1 %v1248_v11  ;;  %v285_v38 = vld [vmem:[#allocation5 + $0x130] sm:$0xff]  ;;  %v1142_v40 = vpack.c.bf16 %v305_v34, %v302_v33  ;;  %v304_v42 = vld [vmem:[#allocation5 + $0x1c8] sm:$0xff]  ;;  %v307_v48 = vld [vmem:[#allocation5 + $0x1e0] sm:$0xff]  ;;  %v1538_v31 = vshrl.u32 %v77_v30, 7 }
  0x4f   :  { %1251 = vmatprep.subr.bf16.mxu1 %v1250_v14  ;;  %v301_v41 = vld [vmem:[#allocation5 + $0x1b0] sm:$0xff]  ;;  %v308_v43 = vld [vmem:[#allocation5 + $0x1e8] sm:$0xff]  ;;  %v1260_v45 = vpack.c.bf16 %v288_v39, %v285_v38  ;;  %v310_v49 = vld [vmem:[#allocation5 + $0x1f8] sm:$0xff] }
  0x50   :  { %1129 = vmatpush1.bf16.msra.mxu0 %v1128_v63  ;;  %v1144_v46 = vpack.c.bf16 %v304_v42, %v301_v41  ;;  %v1146_v47 = vpack.c.bf16 %v311_v44, %v308_v43  ;;  %v314_v50 = vld [vmem:[#allocation5 + $0x218] sm:$0xff]  ;;  %v317_v51 = vld [vmem:[#allocation5 + $0x230] sm:$0xff]  ;;  %v1148_v52 = vpack.c.bf16 %v310_v49, %v307_v48  ;;  %v316_v55 = vld [vmem:[#allocation5 + $0x228] sm:$0xff]  ;;  %v79_v32 = vsub.s32 0, %v1538_v31 }
  0x51   :  { %1131 = vmatprep.subr.bf16.mxu0 %v1130_v4  ;;  %v1150_v53 = vpack.c.bf16 %v317_v51, %v314_v50  ;;  %v313_v54 = vld [vmem:[#allocation5 + $0x210] sm:$0xff]  ;;  %v320_v56 = vld [vmem:[#allocation5 + $0x248] sm:$0xff]  ;;  %v323_v57 = vld [vmem:[#allocation5 + $0x260] sm:$0xff]  ;;  %v83_v34 = vsub.s32 1, %v1538_v31 }
  0x52   :  { %1253 = vmatpush3.bf16.msra.mxu1 %v1252_v23  ;;  %v1152_v58 = vpack.c.bf16 %v316_v55, %v313_v54  ;;  %v1154_v59 = vpack.c.bf16 %v323_v57, %v320_v56  ;;  %v319_v60 = vld [vmem:[#allocation5 + $0x240] sm:$0xff]  ;;  %v322_v61 = vld [vmem:[#allocation5 + $0x258] sm:$0xff]  ;;  %v329_v63 = vld [vmem:[#allocation5 + $0x290] sm:$0xff] }
  0x53   :  { %1255 = vmatprep.subr.bf16.mxu1 %v1254_v26  ;;  %v326_v62 = vld [vmem:[#allocation5 + $0x278] sm:$0xff]  ;;  %v1156_v1 = vpack.c.bf16 %v322_v61, %v319_v60  ;;  %v325_v3 = vld [vmem:[#allocation5 + $0x270] sm:$0xff]  ;;  %v328_v4 = vld [vmem:[#allocation5 + $0x288] sm:$0xff] }
  0x54   :  { %1133 = vmatpush1.bf16.msra.mxu0 %v1132_v12  ;;  %v1158_v2 = vpack.c.bf16 %v329_v63, %v326_v62  ;;  %v332_v5 = vld [vmem:[#allocation5 + $0x2a8] sm:$0xff]  ;;  %v335_v6 = vld [vmem:[#allocation5 + $0x2c0] sm:$0xff]  ;;  %v1160_v7 = vpack.c.bf16 %v328_v4, %v325_v3  ;;  %v334_v10 = vld [vmem:[#allocation5 + $0x2b8] sm:$0xff] }
  0x55   :  { %1135 = vmatprep.subr.bf16.mxu0 %v1134_v17  ;;  %v1162_v8 = vpack.c.bf16 %v335_v6, %v332_v5  ;;  %v331_v9 = vld [vmem:[#allocation5 + $0x2a0] sm:$0xff]  ;;  %v338_v12 = vld [vmem:[#allocation5 + $0x2d8] sm:$0xff]  ;;  %v341_v13 = vld [vmem:[#allocation5 + $0x2f0] sm:$0xff] }
  0x56   :  { %1257 = vmatpush3.bf16.msra.mxu1 %v1256_v35  ;;  %v1164_v11 = vpack.c.bf16 %v334_v10, %v331_v9  ;;  %v339_v14 = vld [vmem:[#allocation5 + $0x2e0] sm:$0xff]  ;;  %v1166_v15 = vpack.c.bf16 %v341_v13, %v338_v12  ;;  %v342_v16 = vld [vmem:[#allocation5 + $0x2f8] sm:$0xff]  ;;  %v337_v17 = vld [vmem:[#allocation5 + $0x2d0] sm:$0xff]  ;;  %v91_v35 = vsub.s32 3, %v1538_v31 }
  0x57   :  { %1259 = vmatprep.subr.bf16.mxu1 %v1258_v37  ;;  %v340_v18 = vld [vmem:[#allocation5 + $0x2e8] sm:$0xff]  ;;  %v1262_v19 = vpack.c.bf16 %v342_v16, %v339_v14  ;;  %v291_v21 = vld [vmem:[#allocation5 + $0x160] sm:$0xff]  ;;  %v294_v22 = vld [vmem:[#allocation5 + $0x178] sm:$0xff] }
  0x58   :  { %1137 = vmatpush1.bf16.msra.mxu0 %v1136_v24  ;;  %v1168_v20 = vpack.c.bf16 %v340_v18, %v337_v17  ;;  %v1264_v23 = vpack.c.bf16 %v294_v22, %v291_v21  ;;  %v344_v24 = vld [vmem:[#allocation5 + $0x308] sm:$0xff]  ;;  %v347_v25 = vld [vmem:[#allocation5 + $0x320] sm:$0xff]  ;;  %v393_v26 = vld [vmem:[#allocation5 + $0x490] sm:$0xff] }
  0x59   :  { %1139 = vmatprep.subr.bf16.mxu0 %v1138_v29  ;;  %v1170_v27 = vpack.c.bf16 %v347_v25, %v344_v24  ;;  %v396_v28 = vld [vmem:[#allocation5 + $0x4a8] sm:$0xff]  ;;  %v1544_v33 = vld [vmem:[%s1587_s3] sm:$0xf]  ;;  %v346_v41 = vld [vmem:[#allocation5 + $0x318] sm:$0xff] }
  0x5a   :  { %1261 = vmatpush3.bf16.msra.mxu1 %v1260_v45  ;;  %v1266_v29 = vpack.c.bf16 %v396_v28, %v393_v26  ;;  %v84_v37 = vrot.slane %v1544_v33, %v83_v34  ;;  %v92_v38 = vrot.slane %v1544_v33, %v91_v35  ;;  %v345_v44 = vld [vmem:[#allocation5 + $0x310] sm:$0xff]  ;;  %v348_v45 = vld [vmem:[#allocation5 + $0x328] sm:$0xff]  ;;  %v399_v50 = vld [vmem:[#allocation5 + $0x4c0] sm:$0xff] }
  0x5b   :  { %1263 = vmatprep.subr.bf16.mxu1 %v1262_v19  ;;  %v353_v49 = vld [vmem:[#allocation5 + $0x350] sm:$0xff]  ;;  %v402_v51 = vld [vmem:[#allocation5 + $0x4d8] sm:$0xff]  ;;  %v1268_v56 = vpack.c.bf16 %v348_v45, %v345_v44  ;;  %v351_v62 = vld [vmem:[#allocation5 + $0x340] sm:$0xff] }
  0x5c   :  { %1141 = vmatpush1.bf16.msra.mxu0 %v1140_v36  ;;  %v80_v36 = vrot.slane %v1544_v33, %v79_v32  ;;  %v349_v57 = vld [vmem:[#allocation5 + $0x330] sm:$0xff]  ;;  %v1270_v61 = vpack.c.bf16 %v402_v51, %v399_v50  ;;  %v354_v63 = vld [vmem:[#allocation5 + $0x358] sm:$0xff]  ;;  %v408_v4 = vld [vmem:[#allocation5 + $0x508] sm:$0xff] }
  0x5d   :  { %1143 = vmatprep.subr.bf16.mxu0 %v1142_v40  ;;  %v343_v40 = vld [vmem:[#allocation5 + $0x300] sm:$0xff]  ;;  %v405_v3 = vld [vmem:[#allocation5 + $0x4f0] sm:$0xff]  ;;  %v358_v9 = vld [vmem:[#allocation5 + $0x378] sm:$0xff] }
  0x5e   :  { %1265 = vmatpush3.bf16.msra.mxu1 %v1264_v23  ;;  %v1172_v55 = vpack.c.bf16 %v346_v41, %v343_v40  ;;  %v357_v12 = vld [vmem:[#allocation5 + $0x370] sm:$0xff]  ;;  %v360_v13 = vld [vmem:[#allocation5 + $0x388] sm:$0xff]  ;;  %v362_v14 = vld [vmem:[#allocation5 + $0x398] sm:$0xff] }
  0x5f   :  { %1267 = vmatprep.subr.bf16.mxu1 %v1266_v29  ;;  %v411_v16 = vld [vmem:[#allocation5 + $0x520] sm:$0xff]  ;;  %v414_v17 = vld [vmem:[#allocation5 + $0x538] sm:$0xff]  ;;  %v1276_v19 = vpack.c.bf16 %v360_v13, %v357_v12  ;;  %v364_v21 = vld [vmem:[#allocation5 + $0x3a8] sm:$0xff] }
  0x60   :  { %1145 = vmatpush1.bf16.msra.mxu0 %v1144_v46  ;;  %v350_v46 = vld [vmem:[#allocation5 + $0x338] sm:$0xff]  ;;  %v1278_v23 = vpack.c.bf16 %v414_v17, %v411_v16  ;;  %v363_v24 = vld [vmem:[#allocation5 + $0x3a0] sm:$0xff]  ;;  %v368_v26 = vld [vmem:[#allocation5 + $0x3c8] sm:$0xff] }
  0x61   :  { %1147 = vmatprep.subr.bf16.mxu0 %v1146_v47  ;;  %v1174_v60 = vpack.c.bf16 %v353_v49, %v350_v46  ;;  %v366_v25 = vld [vmem:[#allocation5 + $0x3b8] sm:$0xff]  ;;  %v417_v28 = vld [vmem:[#allocation5 + $0x550] sm:$0xff]  ;;  %v420_v29 = vld [vmem:[#allocation5 + $0x568] sm:$0xff] }
  0x62   :  { %v1280_v35 = vpack.c.bf16 %v366_v25, %v363_v24  ;;  %v369_v40 = vld [vmem:[#allocation5 + $0x3d0] sm:$0xff]  ;;  %v372_v41 = vld [vmem:[#allocation5 + $0x3e8] sm:$0xff]  ;;  %v423_v44 = vld [vmem:[#allocation5 + $0x580] sm:$0xff] }
  0x63   :  { %v426_v45 = vld [vmem:[#allocation5 + $0x598] sm:$0xff]  ;;  %v373_v49 = vld [vmem:[#allocation5 + $0x3f0] sm:$0xff]  ;;  %v376_v50 = vld [vmem:[#allocation5 + $0x408] sm:$0xff] }
  0x64   :  { %1149 = vmatpush1.bf16.msra.mxu0 %v1148_v52  ;;  %v385_v12 = vld [vmem:[#allocation5 + $0x450] sm:$0xff]  ;;  %v387_v16 = vld [vmem:[#allocation5 + $0x460] sm:$0xff]  ;;  %v390_v17 = vld [vmem:[#allocation5 + $0x478] sm:$0xff] }
  0x65   :  { %1151 = vmatprep.subr.bf16.mxu0 %v1150_v53  ;;  %v394_v24 = vld [vmem:[#allocation5 + $0x498] sm:$0xff] }
  0x66   :  { %v398_v25 = vld [vmem:[#allocation5 + $0x4b8] sm:$0xff] }
  0x68   :  { %1153 = vmatpush1.bf16.msra.mxu0 %v1152_v58  ;;  %v352_v58 = vld [vmem:[#allocation5 + $0x348] sm:$0xff] }
  0x69   :  { %1155 = vmatprep.subr.bf16.mxu0 %v1154_v59  ;;  %v1176_v6 = vpack.c.bf16 %v352_v58, %v349_v57  ;;  %v429_v57 = vld [vmem:[#allocation5 + $0x5b0] sm:$0xff]  ;;  %v432_v58 = vld [vmem:[#allocation5 + $0x5c8] sm:$0xff] }
  0x6c   :  { %1157 = vmatpush1.bf16.msra.mxu0 %v1156_v1  ;;  %v356_v1 = vld [vmem:[#allocation5 + $0x368] sm:$0xff] }
  0x6d   :  { %1159 = vmatprep.subr.bf16.mxu0 %v1158_v2  ;;  %v359_v2 = vld [vmem:[#allocation5 + $0x380] sm:$0xff] }
  0x6e   :  { %v1178_v10 = vpack.c.bf16 %v359_v2, %v356_v1  ;;  %v1290_v2 = vpack.c.bf16 %v432_v58, %v429_v57  ;;  %v421_v58 = vld [vmem:[#allocation5 + $0x570] sm:$0xff] }
  0x70   :  { %1161 = vmatpush1.bf16.msra.mxu0 %v1160_v7  ;;  %v1272_v7 = vpack.c.bf16 %v354_v63, %v351_v62  ;;  %v379_v62 = vld [vmem:[#allocation5 + $0x420] sm:$0xff]  ;;  %v382_v63 = vld [vmem:[#allocation5 + $0x438] sm:$0xff] }
  0x71   :  { %1163 = vmatprep.subr.bf16.mxu0 %v1162_v8  ;;  %v355_v8 = vld [vmem:[#allocation5 + $0x360] sm:$0xff] }
  0x72   :  { %v1180_v18 = vpack.c.bf16 %v358_v9, %v355_v8  ;;  %v438_v8 = vld [vmem:[#allocation5 + $0x5f8] sm:$0xff] }
  0x74   :  { %1165 = vmatpush1.bf16.msra.mxu0 %v1164_v11  ;;  %v1274_v11 = vpack.c.bf16 %v408_v4, %v405_v3  ;;  %v381_v3 = vld [vmem:[#allocation5 + $0x430] sm:$0xff]  ;;  %v384_v4 = vld [vmem:[#allocation5 + $0x448] sm:$0xff] }
  0x75   :  { %1167 = vmatprep.subr.bf16.mxu0 %v1166_v15  ;;  %v365_v15 = vld [vmem:[#allocation5 + $0x3b0] sm:$0xff] }
  0x76   :  { %v1182_v22 = vpack.c.bf16 %v365_v15, %v362_v14  ;;  %v388_v15 = vld [vmem:[#allocation5 + $0x468] sm:$0xff] }
  0x78   :  { %1169 = vmatpush1.bf16.msra.mxu0 %v1168_v20  ;;  %v361_v20 = vld [vmem:[#allocation5 + $0x390] sm:$0xff] }
  0x79   :  { %1171 = vmatprep.subr.bf16.mxu0 %v1170_v27  ;;  %v371_v27 = vld [vmem:[#allocation5 + $0x3e0] sm:$0xff]  ;;  %v1184_v30 = vpack.c.bf16 %v364_v21, %v361_v20  ;;  %v1296_v21 = vpack.c.bf16 %v390_v17, %v387_v16  ;;  %v759_v17 = vld [vmem:[#allocation7 + $0x90] sm:$0xff] }
 0x10d   :  { %v167_v39 = vpop.f32.mrb[0].mxu0  ;;  %v1555_v47 = vpop.f32.mrb[0].mxu1 }
 0x10e   :  { %v168_v42 = vadd.f32 %v167_v39, %v80_v36  ;;  %v169_v43 = vpop.f32.mrb[1].mxu0  ;;  %v240_v52 = vpop.f32.mrb[1].mxu1  ;;  %v367_v36 = vld [vmem:[#allocation5 + $0x3c0] sm:$0xff]  ;;  %v1282_v39 = vpack.c.bf16 %v420_v29, %v417_v28 }
 0x10f   :  { %v170_v48 = vadd.f32 %v169_v43, %v84_v37  ;;  %v241_v53 = vadd.f32 %v240_v52, %v92_v38  ;;  %v370_v37 = vld [vmem:[#allocation5 + $0x3d8] sm:$0xff]  ;;  %v1186_v38 = vpack.c.bf16 %v371_v27, %v368_v26  ;;  %v377_v43 = vld [vmem:[#allocation5 + $0x410] sm:$0xff]  ;;  %v1286_v52 = vpack.c.bf16 %v426_v45, %v423_v44 }
 0x110   :  { %v243_v59 = vmax.f32 %v168_v42, 0.0  ;;  %v374_v42 = vld [vmem:[#allocation5 + $0x3f8] sm:$0xff]  ;;  %v1188_v46 = vpack.c.bf16 %v370_v37, %v367_v36  ;;  %v401_v26 = vld [vmem:[#allocation5 + $0x4d0] sm:$0xff]  ;;  %v407_v36 = vld [vmem:[#allocation5 + $0x500] sm:$0xff] }
 0x111   :  { %v244_v54 = vmax.f32 %v170_v48, 0.0  ;;  %v246_v5 = vmax.f32 %v241_v53, 0.0  ;;  %v1284_v48 = vpack.c.bf16 %v372_v41, %v369_v40  ;;  %v1190_v51 = vpack.c.bf16 %v377_v43, %v374_v42  ;;  %v375_v53 = vld [vmem:[#allocation5 + $0x400] sm:$0xff]  ;;  %v406_v40 = vld [vmem:[#allocation5 + $0x4f8] sm:$0xff]  ;;  %v413_v42 = vld [vmem:[#allocation5 + $0x530] sm:$0xff] }
 0x112   :  { %v1206_v29 = vpack.c.bf16 %v401_v26, %v398_v25  ;;  %v410_v41 = vld [vmem:[#allocation5 + $0x518] sm:$0xff]  ;;  %v409_v45 = vld [vmem:[#allocation5 + $0x510] sm:$0xff]  ;;  %v745_v25 = vld [vmem:[#allocation7 + $0x20] sm:$0xff] }
 0x113   :  { %520 = vmatprep.mubr.f32.mxu0 %v244_v54  ;;  %662 = vmatprep.mubr.f32.mxu1 %v244_v54  ;;  %v378_v54 = vld [vmem:[#allocation5 + $0x418] sm:$0xff]  ;;  %v1214_v44 = vpack.c.bf16 %v413_v42, %v410_v41  ;;  %v746_v26 = vld [vmem:[#allocation7 + $0x28] sm:$0xff]  ;;  %v767_v42 = vld [vmem:[#allocation7 + $0xd0] sm:$0xff] }
 0x114   :  { %521 = vmatmul.mubr.f32.vlgmr.msra.gmra.mrb[2].mxu0 %v243_v59  ;;  %663 = vmatmul.mubr.f32.vlgmr.msra.gmra.mrb[2].mxu1 %v243_v59  ;;  %v87_v59 = vsub.s32 2, %v1538_v31  ;;  %v750_v41 = vld [vmem:[#allocation7 + $0x48] sm:$0xff]  ;;  %v777_v31 = vld [vmem:[#allocation7 + $0x120] sm:$0xff] }
 0x115   :  { %1173 = vmatpush1.bf16.msra.mxu0 %v1172_v55  ;;  %1269 = vmatpush3.bf16.msra.mxu1 %v1268_v56  ;;  %v380_v55 = vld [vmem:[#allocation5 + $0x428] sm:$0xff]  ;;  %v383_v56 = vld [vmem:[#allocation5 + $0x440] sm:$0xff] }
 0x116   :  { %1175 = vmatprep.subr.bf16.mxu0 %v1174_v60  ;;  %1271 = vmatprep.subr.bf16.mxu1 %v1270_v61  ;;  %v1192_v60 = vpack.c.bf16 %v376_v50, %v373_v49  ;;  %v1288_v61 = vpack.c.bf16 %v378_v54, %v375_v53  ;;  %v1194_v1 = vpack.c.bf16 %v383_v56, %v380_v55  ;;  %v419_v49 = vld [vmem:[#allocation5 + $0x560] sm:$0xff]  ;;  %v418_v53 = vld [vmem:[#allocation5 + $0x558] sm:$0xff]  ;;  %v425_v55 = vld [vmem:[#allocation5 + $0x590] sm:$0xff] }
 0x117   :  { %732 = vmatprep.mubr.f32.mxu1 %v246_v5  ;;  %591 = vmatprep.mubr.f32.mxu0 %v246_v5  ;;  %v386_v5 = vld [vmem:[#allocation5 + $0x458] sm:$0xff]  ;;  %v88_v9 = vrot.slane %v1544_v33, %v87_v59  ;;  %v1200_v33 = vpack.c.bf16 %v388_v15, %v385_v12  ;;  %v758_v12 = vld [vmem:[#allocation7 + $0x88] sm:$0xff] }
 0x118   :  { %v422_v54 = vld [vmem:[#allocation5 + $0x578] sm:$0xff]  ;;  %v742_v15 = vld [vmem:[#allocation7 + $0x8] sm:$0xff] }
 0x119   :  { %1177 = vmatpush1.bf16.msra.mxu0 %v1176_v6  ;;  %1273 = vmatpush3.bf16.msra.mxu1 %v1272_v7  ;;  %v389_v6 = vld [vmem:[#allocation5 + $0x470] sm:$0xff]  ;;  %v435_v7 = vld [vmem:[#allocation5 + $0x5e0] sm:$0xff]  ;;  %v1562_v20 = vadd.f32 %v1555_v47, %v88_v9  ;;  %v1222_v57 = vpack.c.bf16 %v425_v55, %v422_v54  ;;  %v436_v9 = vld [vmem:[#allocation5 + $0x5e8] sm:$0xff] }
 0x11a   :  { %1179 = vmatprep.subr.bf16.mxu0 %v1178_v10  ;;  %1275 = vmatprep.subr.bf16.mxu1 %v1274_v11  ;;  %v1196_v10 = vpack.c.bf16 %v382_v63, %v379_v62  ;;  %v1292_v11 = vpack.c.bf16 %v384_v4, %v381_v3  ;;  %v1198_v13 = vpack.c.bf16 %v389_v6, %v386_v5  ;;  %v397_v47 = vld [vmem:[#allocation5 + $0x4b0] sm:$0xff]  ;;  %v431_v62 = vld [vmem:[#allocation5 + $0x5c0] sm:$0xff]  ;;  %v430_v3 = vld [vmem:[#allocation5 + $0x5b8] sm:$0xff] }
 0x11b   :  { %v1294_v14 = vpack.c.bf16 %v438_v8, %v435_v7  ;;  %v245_v27 = vmax.f32 %v1562_v20, 0.0  ;;  %v434_v4 = vld [vmem:[#allocation5 + $0x5d8] sm:$0xff]  ;;  %v437_v5 = vld [vmem:[#allocation5 + $0x5f0] sm:$0xff]  ;;  %v754_v54 = vld [vmem:[#allocation7 + $0x68] sm:$0xff] }
 0x11c   :  { %v1230_v7 = vpack.c.bf16 %v437_v5, %v434_v4  ;;  %v433_v8 = vld [vmem:[#allocation5 + $0x5d0] sm:$0xff]  ;;  %v439_v4 = vld [vmem:[%s1589_s5] sm:$0x7] }
 0x11d   :  { %1181 = vmatpush1.bf16.msra.mxu0 %v1180_v18  ;;  %1277 = vmatpush3.bf16.msra.mxu1 %v1276_v19  ;;  %v392_v18 = vld [vmem:[#allocation5 + $0x488] sm:$0xff]  ;;  %v395_v19 = vld [vmem:[#allocation5 + $0x4a0] sm:$0xff]  ;;  %v452_v5 = vrot.slane %v439_v4, %v87_v59 }
 0x11e   :  { %1183 = vmatprep.subr.bf16.mxu0 %v1182_v22  ;;  %1279 = vmatprep.subr.bf16.mxu1 %v1278_v23  ;;  %v1202_v22 = vpack.c.bf16 %v395_v19, %v392_v18  ;;  %v391_v23 = vld [vmem:[#allocation5 + $0x480] sm:$0xff]  ;;  %v760_v18 = vld [vmem:[#allocation7 + $0x98] sm:$0xff]  ;;  %v743_v19 = vld [vmem:[#allocation7 + $0x10] sm:$0xff] }
 0x11f   :  { %v1204_v28 = vpack.c.bf16 %v394_v24, %v391_v23  ;;  %v1302_v20 = vpack.c.bf16 %v760_v18, %v759_v17  ;;  %v774_v17 = vld [vmem:[#allocation7 + $0x108] sm:$0xff] }
 0x121   :  { %1185 = vmatpush1.bf16.msra.mxu0 %v1184_v30  ;;  %1281 = vmatpush3.bf16.msra.mxu1 %v1280_v35  ;;  %v400_v30 = vld [vmem:[#allocation5 + $0x4c8] sm:$0xff] }
 0x122   :  { %1187 = vmatprep.subr.bf16.mxu0 %v1186_v38  ;;  %1283 = vmatprep.subr.bf16.mxu1 %v1282_v39  ;;  %v404_v35 = vld [vmem:[#allocation5 + $0x4e8] sm:$0xff]  ;;  %v1208_v37 = vpack.c.bf16 %v400_v30, %v397_v47  ;;  %v403_v39 = vld [vmem:[#allocation5 + $0x4e0] sm:$0xff]  ;;  %v747_v30 = vld [vmem:[#allocation7 + $0x30] sm:$0xff] }
 0x123   :  { %v1210_v38 = vpack.c.bf16 %v407_v36, %v404_v35  ;;  %v1212_v43 = vpack.c.bf16 %v406_v40, %v403_v39  ;;  %v748_v35 = vld [vmem:[#allocation7 + $0x38] sm:$0xff]  ;;  %v765_v36 = vld [vmem:[#allocation7 + $0xc0] sm:$0xff] }
 0x124   :  { %v749_v40 = vld [vmem:[#allocation7 + $0x40] sm:$0xff] }
 0x125   :  { %1189 = vmatpush1.bf16.msra.mxu0 %v1188_v46  ;;  %1285 = vmatpush3.bf16.msra.mxu1 %v1284_v48  ;;  %v412_v46 = vld [vmem:[#allocation5 + $0x528] sm:$0xff] }
 0x126   :  { %1191 = vmatprep.subr.bf16.mxu0 %v1190_v51  ;;  %1287 = vmatprep.subr.bf16.mxu1 %v1286_v52  ;;  %v416_v48 = vld [vmem:[#allocation5 + $0x548] sm:$0xff]  ;;  %v1216_v50 = vpack.c.bf16 %v412_v46, %v409_v45  ;;  %v415_v52 = vld [vmem:[#allocation5 + $0x540] sm:$0xff]  ;;  %v751_v46 = vld [vmem:[#allocation7 + $0x50] sm:$0xff] }
 0x127   :  { %v1218_v51 = vpack.c.bf16 %v419_v49, %v416_v48  ;;  %v1220_v56 = vpack.c.bf16 %v418_v53, %v415_v52  ;;  %v752_v48 = vld [vmem:[#allocation7 + $0x58] sm:$0xff]  ;;  %v769_v49 = vld [vmem:[#allocation7 + $0xe0] sm:$0xff] }
 0x128   :  { %v753_v53 = vld [vmem:[#allocation7 + $0x60] sm:$0xff] }
 0x129   :  { %1193 = vmatpush1.bf16.msra.mxu0 %v1192_v60  ;;  %1289 = vmatpush3.bf16.msra.mxu1 %v1288_v61  ;;  %v424_v60 = vld [vmem:[#allocation5 + $0x588] sm:$0xff]  ;;  %v1324_v55 = vpack.c.bf16 %v754_v54, %v753_v53 }
 0x12a   :  { %1195 = vmatprep.subr.bf16.mxu0 %v1194_v1  ;;  %1291 = vmatprep.subr.bf16.mxu1 %v1290_v2  ;;  %v428_v61 = vld [vmem:[#allocation5 + $0x5a8] sm:$0xff]  ;;  %v1224_v63 = vpack.c.bf16 %v424_v60, %v421_v58  ;;  %v427_v2 = vld [vmem:[#allocation5 + $0x5a0] sm:$0xff]  ;;  %v755_v60 = vld [vmem:[#allocation7 + $0x70] sm:$0xff] }
 0x12b   :  { %v1226_v1 = vpack.c.bf16 %v431_v62, %v428_v61  ;;  %v1228_v6 = vpack.c.bf16 %v430_v3, %v427_v2  ;;  %v756_v61 = vld [vmem:[#allocation7 + $0x78] sm:$0xff] }
 0x12c   :  { %v1328_v62 = vpack.c.bf16 %v756_v61, %v755_v60 }
 0x12d   :  { %1197 = vmatpush1.bf16.msra.mxu0 %v1196_v10  ;;  %1293 = vmatpush3.bf16.msra.mxu1 %v1292_v11  ;;  %v1232_v10 = vpack.c.bf16 %v436_v9, %v433_v8  ;;  %v757_v11 = vld [vmem:[#allocation7 + $0x80] sm:$0xff] }
 0x12e   :  { %1199 = vmatprep.subr.bf16.mxu0 %v1198_v13  ;;  %1295 = vmatprep.subr.bf16.mxu1 %v1294_v14  ;;  %v1298_v13 = vpack.c.bf16 %v758_v12, %v757_v11  ;;  %v741_v14 = vld [vmem:[#allocation7] sm:$0xff]  ;;  %v444_v11 = vrot.slane %v439_v4, %v79_v32  ;;  %v448_v12 = vrot.slane %v439_v4, %v83_v34  ;;  %v778_v32 = vld [vmem:[#allocation7 + $0x128] sm:$0xff] }
 0x12f   :  { %v1300_v16 = vpack.c.bf16 %v742_v15, %v741_v14  ;;  %v1337_v34 = vpack.c.bf16 %v778_v32, %v777_v31 }
 0x131   :  { %1201 = vmatpush1.bf16.msra.mxu0 %v1200_v33  ;;  %1297 = vmatpush3.bf16.msra.mxu1 %v1296_v21  ;;  %v744_v33 = vld [vmem:[#allocation7 + $0x18] sm:$0xff]  ;;  %v761_v21 = vld [vmem:[#allocation7 + $0xa0] sm:$0xff] }
 0x132   :  { %1203 = vmatprep.subr.bf16.mxu0 %v1202_v22  ;;  %1299 = vmatprep.subr.bf16.mxu1 %v1298_v13  ;;  %v762_v22 = vld [vmem:[#allocation7 + $0xa8] sm:$0xff]  ;;  %v1304_v23 = vpack.c.bf16 %v744_v33, %v743_v19  ;;  %v775_v33 = vld [vmem:[#allocation7 + $0x110] sm:$0xff] }
 0x133   :  { %v1306_v24 = vpack.c.bf16 %v762_v22, %v761_v21  ;;  %v776_v21 = vld [vmem:[#allocation7 + $0x118] sm:$0xff] }
 0x134   :  { %733 = vmatmul.mubr.f32.vlgmr.msra.gmra.mrb[4].mxu1 %v245_v27  ;;  %v1334_v22 = vpack.c.bf16 %v776_v21, %v775_v33 }
 0x135   :  { %1205 = vmatpush1.bf16.msra.mxu0 %v1204_v28  ;;  %1301 = vmatpush3.bf16.msra.mxu1 %v1300_v16  ;;  %v764_v28 = vld [vmem:[#allocation7 + $0xb8] sm:$0xff]  ;;  %v773_v16 = vld [vmem:[#allocation7 + $0x100] sm:$0xff] }
 0x136   :  { %1207 = vmatprep.subr.bf16.mxu0 %v1206_v29  ;;  %1303 = vmatprep.subr.bf16.mxu1 %v1302_v20  ;;  %v1308_v29 = vpack.c.bf16 %v746_v26, %v745_v25  ;;  %v1331_v20 = vpack.c.bf16 %v774_v17, %v773_v16  ;;  %v781_v26 = vld [vmem:[#allocation7 + $0x140] sm:$0xff] }
 0x139   :  { %1209 = vmatpush1.bf16.msra.mxu0 %v1208_v37  ;;  %1305 = vmatpush3.bf16.msra.mxu1 %v1304_v23  ;;  %v766_v37 = vld [vmem:[#allocation7 + $0xc8] sm:$0xff]  ;;  %v779_v23 = vld [vmem:[#allocation7 + $0x130] sm:$0xff] }
 0x13a   :  { %1211 = vmatprep.subr.bf16.mxu0 %v1210_v38  ;;  %1307 = vmatprep.subr.bf16.mxu1 %v1306_v24  ;;  %v1312_v38 = vpack.c.bf16 %v748_v35, %v747_v30  ;;  %v1314_v39 = vpack.c.bf16 %v766_v37, %v765_v36  ;;  %v780_v24 = vld [vmem:[#allocation7 + $0x138] sm:$0xff]  ;;  %v785_v30 = vld [vmem:[#allocation7 + $0x160] sm:$0xff]  ;;  %v786_v35 = vld [vmem:[#allocation7 + $0x168] sm:$0xff] }
 0x13b   :  { %v1340_v25 = vpack.c.bf16 %v780_v24, %v779_v23  ;;  %v1349_v36 = vpack.c.bf16 %v786_v35, %v785_v30  ;;  %v787_v37 = vld [vmem:[#allocation7 + $0x170] sm:$0xff] }
 0x13d   :  { %1213 = vmatpush1.bf16.msra.mxu0 %v1212_v43  ;;  %1309 = vmatpush3.bf16.msra.mxu1 %v1308_v29  ;;  %v768_v43 = vld [vmem:[#allocation7 + $0xd8] sm:$0xff]  ;;  %v783_v29 = vld [vmem:[#allocation7 + $0x150] sm:$0xff] }
 0x13e   :  { %1215 = vmatprep.subr.bf16.mxu0 %v1214_v44  ;;  %v1316_v44 = vpack.c.bf16 %v750_v41, %v749_v40  ;;  %v1318_v45 = vpack.c.bf16 %v768_v43, %v767_v42 }
 0x141   :  { %1217 = vmatpush1.bf16.msra.mxu0 %v1216_v50  ;;  %v770_v50 = vld [vmem:[#allocation7 + $0xe8] sm:$0xff] }
 0x142   :  { %1219 = vmatprep.subr.bf16.mxu0 %v1218_v51  ;;  %v1320_v51 = vpack.c.bf16 %v752_v48, %v751_v46  ;;  %v1322_v52 = vpack.c.bf16 %v770_v50, %v769_v49  ;;  %v937_v50 = vstv %s1584_s0 }
 0x145   :  { %1221 = vmatpush1.bf16.msra.mxu0 %v1220_v56  ;;  %v771_v56 = vld [vmem:[#allocation7 + $0xf0] sm:$0xff] }
 0x146   :  { %1223 = vmatprep.subr.bf16.mxu0 %v1222_v57  ;;  %v772_v57 = vld [vmem:[#allocation7 + $0xf8] sm:$0xff] }
 0x147   :  { %v1326_v58 = vpack.c.bf16 %v772_v57, %v771_v56 }
 0x149   :  { %1225 = vmatpush1.bf16.msra.mxu0 %v1224_v63  ;;  %v1448_v63 = vmov 0.0|0.0  }
 0x14a   :  { %1227 = vmatprep.subr.bf16.mxu0 %v1226_v1 }
 0x14d   :  { %1229 = vmatpush1.bf16.msra.mxu0 %v1228_v6 }
 0x14e   :  { %1231 = vmatprep.subr.bf16.mxu0 %v1230_v7 }
 0x151   :  { %1233 = vmatpush1.bf16.msra.mxu0 %v1232_v10 }
 0x154   :  { %592 = vmatmul.mubr.f32.vlgmr.msra.gmra.mrb[2].mxu0 %v245_v27  ;;  %v763_v27 = vld [vmem:[#allocation7 + $0xb0] sm:$0xff] }
 0x155   :  { %v1310_v47 = vpack.c.bf16 %v764_v28, %v763_v27  ;;  %v782_v27 = vld [vmem:[#allocation7 + $0x148] sm:$0xff] }
 0x156   :  { %v1343_v28 = vpack.c.bf16 %v782_v27, %v781_v26 }
 0x157   :  { %1311 = vmatprep.subr.bf16.mxu1 %v1310_v47  ;;  %v784_v47 = vld [vmem:[#allocation7 + $0x158] sm:$0xff] }
 0x158   :  { %1313 = vmatpush3.bf16.msra.mxu1 %v1312_v38  ;;  %v788_v38 = vld [vmem:[#allocation7 + $0x178] sm:$0xff] }
 0x159   :  { %1315 = vmatprep.subr.bf16.mxu1 %v1314_v39  ;;  %v1352_v39 = vpack.c.bf16 %v788_v38, %v787_v37 }
 0x15c   :  { %1317 = vmatpush3.bf16.msra.mxu1 %v1316_v44  ;;  %v948_v44 = vld [vmem:[%s1591_s7] ss:$0 sm:$0xff] }
 0x15d   :  { %1319 = vmatprep.subr.bf16.mxu1 %v1318_v45 }
 0x160   :  { %1321 = vmatpush3.bf16.msra.mxu1 %v1320_v51 }
 0x161   :  { %1323 = vmatprep.subr.bf16.mxu1 %v1322_v52 }
 0x164   :  { %1325 = vmatpush3.bf16.msra.mxu1 %v1324_v55 }
 0x165   :  { %1327 = vmatprep.subr.bf16.mxu1 %v1326_v58 }
 0x168   :  { %1329 = vmatpush3.bf16.msra.mxu1 %v1328_v62 }
 0x169   :  { %1330 = vmatprep.subr.bf16.mxu1 %v1448_v63 }
 0x1e7   :  { %v981_v1 = vpop.f32.mrb[2].mxu1 }
 0x1e8   :  { %v982_v2 = vpop.f32.mrb[3].mxu1 }
 0x1e9   :  { %v983_v3 = vadd.f32 %v982_v2, %v981_v1 }
 0x1eb   :  { %v665_v8 = vadd.f32 %v983_v3, %v452_v5 }
 0x207   :  { %v1016_v6 = vpop.f32.mrb[4].mxu1 }
 0x208   :  { %v1017_v7 = vpop.f32.mrb[5].mxu1 }
 0x209   :  { %v1018_v9 = vadd.f32 %v1017_v7, %v1016_v6 }
 0x20b   :  { %v735_v10 = vadd.f32 %v1018_v9, %v665_v8 }
 0x20d   :  { %v740_v40 = vmax.f32 %v735_v10, 0.0 }
 0x227   :  { %v593_v13 = vpop.f32.mrb[2].mxu0 }
 0x228   :  { %v1354_v14 = vadd.f32 %v593_v13, %v444_v11  ;;  %v595_v15 = vpop.f32.mrb[3].mxu0 }
 0x229   :  { %v1355_v18 = vadd.f32 %v595_v15, %v448_v12 }
 0x22a   :  { %v738_v59 = vmax.f32 %v1354_v14, 0.0 }
 0x22b   :  { %v739_v19 = vmax.f32 %v1355_v18, 0.0 }
 0x22d   :  { %860 = vmatprep.mubr.f32.mxu1 %v739_v19 }
 0x22e   :  { %861 = vmatmul.mubr.f32.vlgmr.msra.gmra.mrb[6].mxu1 %v738_v59 }
 0x22f   :  { %1332 = vmatpush3.bf16.msra.mxu1 %v1331_v20  ;;  %1103 = vmatprep.mubr.msk.f32.mxu1 %vm1449_vm1, %v1447_v0  ;;  %v1346_v0 = vpack.c.bf16 %v784_v47, %v783_v29 }
 0x230   :  { %1333 = vmatprep.subr.bf16.mxu1 %v1448_v63 }
 0x233   :  { %1335 = vmatpush3.bf16.msra.mxu1 %v1334_v22 }
 0x234   :  { %1336 = vmatprep.subr.bf16.mxu1 %v1448_v63 }
 0x237   :  { %1338 = vmatpush3.bf16.msra.mxu1 %v1337_v34 }
 0x238   :  { %1339 = vmatprep.subr.bf16.mxu1 %v1448_v63 }
 0x23b   :  { %1341 = vmatpush3.bf16.msra.mxu1 %v1340_v25 }
 0x23c   :  { %1342 = vmatprep.subr.bf16.mxu1 %v1448_v63 }
 0x23f   :  { %1344 = vmatpush3.bf16.msra.mxu1 %v1343_v28 }
 0x240   :  { %1345 = vmatprep.subr.bf16.mxu1 %v1448_v63 }
 0x243   :  { %1347 = vmatpush3.bf16.msra.mxu1 %v1346_v0 }
 0x244   :  { %1348 = vmatprep.subr.bf16.mxu1 %v1448_v63 }
 0x247   :  { %1350 = vmatpush3.bf16.msra.mxu1 %v1349_v36 }
 0x248   :  { %1351 = vmatprep.subr.bf16.mxu1 %v1448_v63 }
 0x24b   :  { %1353 = vmatpush3.bf16.msra.mxu1 %v1352_v39 }
 0x24e   :  { %1104 = vmatmul.mubr.f32.vlgmr.msra.gmra.mrb[8].mxu1 %v740_v40 }
 0x301   :  { %v1051_v41 = vpop.f32.mrb[6].mxu1 }
 0x302   :  { %v1052_v42 = vpop.f32.mrb[7].mxu1 }
 0x303   :  { %v1053_v43 = vadd.f32 %v1052_v42, %v1051_v41 }
 0x305   :  { %v863_v45 = vadd.f32 %v1053_v43, %v948_v44 }
 0x321   :  { %v932_v46 = vpop.f32.mrb[8].mxu1 }
 0x322   :  { %v933_v48 = vadd.f32 %v932_v46, %v863_v45  ;;  %v1105_v49 = vpop.f32.mrb[9].mxu1 }
 0x324   :  { %1368 = vtanh.f32 %v933_v48 }
 0x32e   :  { %v1369_v51 = vpop.eup %1368 }
 0x32f   :  { %v938_v52 = vmul.f32 %v1369_v51, %v937_v50 }
 0x331   :  { %939 = vst [vmem:[%s1592_s8] sm:$0xff] %v938_v52 }
 0x332   :  { %944 = vsyncpa [#allocation4], 1 }
 0x333   :  { %945 = vsyncpa [#allocation6], 1 }

</bundles_post_ra>
